<compile_context>
chip_gen: v5e
topology: v5e:2x2
jax: 0.10.0
libtpu: 0.0.40
codegen_flags: <defaults>
</compile_context>

<pallas_src>
import functools
import math

import jax
import jax.numpy as jnp
from jax.experimental import pallas as pl
from jax.experimental.pallas import tpu as pltpu

LANES = 128
_CHUNK_BYTES = 4 * 1024 * 1024      # ~4 MiB per DMA chunk (bandwidth plateau)
_N_FLIGHT = 4                       # chunk DMAs kept in flight
_MIN_PALLAS_BYTES = 1 << 20         # below this a metadata reshape always wins


def _dma_copy_kernel(x_hbm, o_hbm, sems, *, chunk_rows, n_full, tail, n_flight):
    """Direct HBM->HBM copy of a (rows, 128) slab with `n_flight` DMAs in flight.

    All sizes are Python statics baked in via functools.partial; only chunk
    start offsets are dynamic inside the pipelined loop.
    """

    def chunk_copy(i, slot):
        start = i * chunk_rows
        return pltpu.make_async_copy(
            x_hbm.at[pl.ds(start, chunk_rows), :],
            o_hbm.at[pl.ds(start, chunk_rows), :],
            sems.at[slot],
        )

    # Ragged tail (< chunk_rows rows, statically sized): kick it off first so it
    # overlaps with the full chunks; it uses its own dedicated semaphore slot.
    if tail:
        tail_copy = pltpu.make_async_copy(
            x_hbm.at[pl.ds(n_full * chunk_rows, tail), :],
            o_hbm.at[pl.ds(n_full * chunk_rows, tail), :],
            sems.at[n_flight],
        )
        tail_copy.start()

    # Prime the pipeline with up to n_flight chunk copies (static unroll).
    for i in range(min(n_flight, n_full)):
        chunk_copy(i, i).start()

    if n_full:
        @pl.loop(0, n_full)
        def _(i):
            slot = i % n_flight
            chunk_copy(i, slot).wait()

            @pl.when(i + n_flight < n_full)
            def _():
                chunk_copy(i + n_flight, slot).start()

    if tail:
        tail_copy.wait()


def _pallas_hbm_copy(slab, chunk_bytes=_CHUNK_BYTES):
    """Copy a lane-dense (rows, 128) slab HBM->HBM via chunked async DMA."""
    rows, lanes = slab.shape
    assert lanes == LANES
    itemsize = jnp.dtype(slab.dtype).itemsize
    sublanes = max(8, 32 // itemsize)            # 8 (f32) / 16 (bf16) / 32 (i8)
    chunk_rows = max(sublanes, (chunk_bytes // (LANES * itemsize)) // sublanes * sublanes)
    chunk_rows = min(chunk_rows, rows)
    n_full, tail = divmod(rows, chunk_rows)

    kernel = functools.partial(
        _dma_copy_kernel,
        chunk_rows=chunk_rows,
        n_full=n_full,
        tail=tail,
        n_flight=_N_FLIGHT,
    )
    return pl.pallas_call(
        kernel,
        out_shape=jax.ShapeDtypeStruct((rows, LANES), slab.dtype),
        in_specs=[pl.BlockSpec(memory_space=pl.ANY)],    # raw HBM ref, no auto-DMA
        out_specs=pl.BlockSpec(memory_space=pl.ANY),
        scratch_shapes=[pltpu.SemaphoreType.DMA((_N_FLIGHT + 1,))],
        cost_estimate=pl.CostEstimate(
            flops=0,
            transcendentals=0,
            bytes_accessed=2 * rows * LANES * itemsize,
        ),
    )(slab)


def reshape_module_forward(x, target_size, *, force_pallas=False,
                           chunk_bytes=_CHUNK_BYTES):
    """Equivalent of ReshapeModule(target_size)(x) == x.reshape(-1, *target_size)."""
    target_size = tuple(int(t) for t in target_size)
    total = math.prod(x.shape)
    tgt_elems = math.prod(target_size)
    if tgt_elems == 0 or total % tgt_elems != 0:
        raise ValueError(
            f"cannot reshape array of size {total} into shape (-1, {target_size})"
        )
    out_shape = (total // tgt_elems,) + target_size

    nbytes = total * jnp.dtype(x.dtype).itemsize
    aligned = (total % LANES) == 0

    # Fast paths: a contiguous reshape is a free metadata op.  Lane-unaligned
    # totals and small tensors never enter the kernel (no pad/unpad passes).
    if not aligned or (not force_pallas and nbytes < _MIN_PALLAS_BYTES):
        return x.reshape(out_shape)

    # Hot path: view the flat buffer as a lane-dense (rows, 128) slab (free),
    # stream it HBM->HBM through the DMA kernel, reinterpret the shape (free).
    slab = x.reshape(total // LANES, LANES)
    copied = _pallas_hbm_copy(slab, chunk_bytes=chunk_bytes)
    return copied.reshape(out_shape)


if __name__ == "__main__":
    key = jax.random.PRNGKey(0)
    k1, k2, k3, k4 = jax.random.split(key, 4)

    # 1) Primary case (forces the Pallas DMA copy): (2,4,16,16) -> (-1,16,16).
    x = jax.random.normal(k1, (2, 4, 16, 16), dtype=jnp.float32)
    y = jax.block_until_ready(reshape_module_forward(x, (16, 16), force_pallas=True))
    assert y.shape == (8, 16, 16), y.shape
    assert y.dtype == x.dtype
    assert bool(jnp.array_equal(y, x.reshape(-1, 16, 16)))

    # 2) Multi-chunk pipeline + ragged tail: 120 rows, 16-row chunks -> 7 full + tail 8.
    x2 = jax.random.normal(k2, (3, 40, 128), dtype=jnp.float32)
    y2 = jax.block_until_ready(
        reshape_module_forward(x2, (8, 16), force_pallas=True, chunk_bytes=8192))
    assert bool(jnp.array_equal(y2, x2.reshape(-1, 8, 16)))

    # 3) bf16 through the kernel.
    x3 = jax.random.normal(k3, (4, 16, 32), dtype=jnp.bfloat16)
    y3 = jax.block_until_ready(reshape_module_forward(x3, (8, 8), force_pallas=True))
    assert bool(jnp.array_equal(y3, x3.reshape(-1, 8, 8)))

    # 4) Fast path: lane-unaligned small tensor -> pure metadata reshape.
    x4 = jax.random.normal(k4, (5, 63), dtype=jnp.float32)   # 315 elems, not % 128
    y4 = jax.block_until_ready(reshape_module_forward(x4, (63,)))
    assert bool(jnp.array_equal(y4, x4.reshape(-1, 63)))

    print("KERNEL_OK")
</pallas_src>

<mosaic_0001>
module attributes {stable_mosaic.version = 11 : i64} {
  func.func @_dma_copy_kernel(%arg0: memref<16x128xf32, #tpu.memory_space<any>>, %arg1: memref<16x128xf32, #tpu.memory_space<any>>, %arg2: memref<5x!tpu.dma_semaphore, #tpu.memory_space<semaphore_mem>>) attributes {dimension_semantics = [], scalar_prefetch = 0 : i64, scratch_operands = 1 : i64, tpu.core_type = #tpu.core_type<tc>} {
    %c0_i32 = arith.constant 0 : i32
    %c0_i32_0 = arith.constant 0 : i32
    %c0_i32_1 = arith.constant 0 : i32
    %0 = tpu.memref_slice %arg0[%c0_i32_0, %c0_i32_1] : memref<16x128xf32, #tpu.memory_space<any>> -> memref<16x128xf32, #tpu.memory_space<any>>
    %c0_i32_2 = arith.constant 0 : i32
    %c0_i32_3 = arith.constant 0 : i32
    %1 = tpu.memref_slice %arg1[%c0_i32_2, %c0_i32_3] : memref<16x128xf32, #tpu.memory_space<any>> -> memref<16x128xf32, #tpu.memory_space<any>>
    %2 = tpu.memref_slice %arg2[%c0_i32] : memref<5x!tpu.dma_semaphore, #tpu.memory_space<semaphore_mem>> -> memref<1x!tpu.dma_semaphore, #tpu.memory_space<semaphore_mem>>
    %3 = tpu.memref_squeeze %2 : memref<1x!tpu.dma_semaphore, #tpu.memory_space<semaphore_mem>> -> memref<!tpu.dma_semaphore, #tpu.memory_space<semaphore_mem>>
    tpu.enqueue_dma source(%0 : memref<16x128xf32, #tpu.memory_space<any>>) target(%1 : memref<16x128xf32, #tpu.memory_space<any>>) target_semaphore(%3 : memref<!tpu.dma_semaphore, #tpu.memory_space<semaphore_mem>>)
    %c0_i32_4 = arith.constant 0 : i32
    %c1_i32 = arith.constant 1 : i32
    %4 = arith.muli %c0_i32_4, %c1_i32 : i32
    %c0_i32_5 = arith.constant 0 : i32
    %5 = arith.addi %c0_i32_5, %4 : i32
    %c4_i32 = arith.constant 4 : i32
    %c0_i32_6 = arith.constant 0 : i32
    %6 = arith.cmpi eq, %c4_i32, %c0_i32_6 : i32
    %c1_i32_7 = arith.constant 1 : i32
    %7 = arith.select %6, %c1_i32_7, %c4_i32 : i32
    %8 = arith.remsi %5, %7 : i32
    %c0_i32_8 = arith.constant 0 : i32
    %9 = arith.cmpi ne, %8, %c0_i32_8 : i32
    %c0_i32_9 = arith.constant 0 : i32
    %10 = arith.cmpi slt, %8, %c0_i32_9 : i32
    %c0_i32_10 = arith.constant 0 : i32
    %11 = arith.cmpi slt, %7, %c0_i32_10 : i32
    %12 = arith.xori %10, %11 : i1
    %13 = arith.andi %12, %9 : i1
    %14 = arith.addi %8, %7 : i32
    %15 = arith.select %13, %14, %8 : i32
    %c16_i32 = arith.constant 16 : i32
    %16 = arith.muli %5, %c16_i32 : i32
    %c0_i32_11 = arith.constant 0 : i32
    %17 = tpu.memref_slice %arg0[%16, %c0_i32_11] : memref<16x128xf32, #tpu.memory_space<any>> -> memref<16x128xf32, #tpu.memory_space<any>>
    %c0_i32_12 = arith.constant 0 : i32
    %18 = tpu.memref_slice %arg1[%16, %c0_i32_12] : memref<16x128xf32, #tpu.memory_space<any>> -> memref<16x128xf32, #tpu.memory_space<any>>
    %19 = tpu.memref_slice %arg2[%15] : memref<5x!tpu.dma_semaphore, #tpu.memory_space<semaphore_mem>> -> memref<1x!tpu.dma_semaphore, #tpu.memory_space<semaphore_mem>>
    %20 = tpu.memref_squeeze %19 : memref<1x!tpu.dma_semaphore, #tpu.memory_space<semaphore_mem>> -> memref<!tpu.dma_semaphore, #tpu.memory_space<semaphore_mem>>
    tpu.wait_dma2 semaphore(%20 : memref<!tpu.dma_semaphore, #tpu.memory_space<semaphore_mem>>) src(%17 : memref<16x128xf32, #tpu.memory_space<any>>) dst(%18 : memref<16x128xf32, #tpu.memory_space<any>>)
    %c4_i32_13 = arith.constant 4 : i32
    %21 = arith.addi %5, %c4_i32_13 : i32
    %c1_i32_14 = arith.constant 1 : i32
    %22 = arith.cmpi slt, %21, %c1_i32_14 : i32
    %23 = arith.extui %22 : i1 to i32
    %c0_i32_15 = arith.constant 0 : i32
    %24 = arith.cmpi ne, %23, %c0_i32_15 : i32
    scf.if %24 {
      %c4_i32_17 = arith.constant 4 : i32
      %25 = arith.addi %5, %c4_i32_17 : i32
      %c16_i32_18 = arith.constant 16 : i32
      %26 = arith.muli %25, %c16_i32_18 : i32
      %c0_i32_19 = arith.constant 0 : i32
      %27 = tpu.memref_slice %arg0[%26, %c0_i32_19] : memref<16x128xf32, #tpu.memory_space<any>> -> memref<16x128xf32, #tpu.memory_space<any>>
      %c0_i32_20 = arith.constant 0 : i32
      %28 = tpu.memref_slice %arg1[%26, %c0_i32_20] : memref<16x128xf32, #tpu.memory_space<any>> -> memref<16x128xf32, #tpu.memory_space<any>>
      %29 = tpu.memref_slice %arg2[%15] : memref<5x!tpu.dma_semaphore, #tpu.memory_space<semaphore_mem>> -> memref<1x!tpu.dma_semaphore, #tpu.memory_space<semaphore_mem>>
      %30 = tpu.memref_squeeze %29 : memref<1x!tpu.dma_semaphore, #tpu.memory_space<semaphore_mem>> -> memref<!tpu.dma_semaphore, #tpu.memory_space<semaphore_mem>>
      tpu.enqueue_dma source(%27 : memref<16x128xf32, #tpu.memory_space<any>>) target(%28 : memref<16x128xf32, #tpu.memory_space<any>>) target_semaphore(%30 : memref<!tpu.dma_semaphore, #tpu.memory_space<semaphore_mem>>)
    } else {
    }
    %c1_i32_16 = arith.constant 1 : i32
    return
  }
}

</mosaic_0001>

<bundles_post_ra>
// kernel: tpu_custom_call.1
= control target key start
LH: loop header
LB: loop body
LE: loop exit
PB: predicated region body
PF: predicated region fallthrough
CT: control target
= control target key end

     0   :  { %s64_s12 = smov [#allocation2]   ;;  %s65_s13 = smov [#allocation3]   ;;  %s83_s0 = inlined_call_operand.hbm [shape: f32[16,128], index: 0, kind: input, shape index: {}]   ;;  %s84_s1 = inlined_call_operand.hbm [shape: f32[16,128], index: 1, kind: output, shape index: {}]  }
   0x1   :  { %s10_s8 = sshll.u32 %s83_s0, 4  ;;  %s12_s11 = sshll.u32 %s84_s1, 4  ;;  %s11_s8 = int_to_ptr.hbm [resolvable:$true] %s10_s8  ;;  %s13_s11 = int_to_ptr.hbm [resolvable:$true] %s12_s11 }
   0x2   :  { %s66_s14 = smov 0  }
   0x3   :  { %16 = dma.general %s11_s8, 256, %s13_s11, %s64_s12, %s65_s13, [#allocation4], %s66_s14, 0  }
   0x4   :  { %62 = dma.done.wait [#allocation2], 256 }
   0x5   :  { %63 = vsyncadd [#allocation2], 4294967040 }
   0x6   :  { %20 = vsyncmov [#allocation2] }
   0x9   :  { %s21_s15 = vpop.sfrf %20 }
   0xa   :  { %p54_p0 = scmp.ne.s32.totalorder %s21_s15, 0 }
   0xc   :  { %25 = shalt.err (%p54_p0)  }
   0xd   :  { %27 = vsyncmov [#allocation2 + $0x1] }
  0x10   :  { %s28_s16 = vpop.sfrf %27 }
  0x11   :  { %p55_p1 = scmp.ne.s32.totalorder %s28_s16, 0 }
  0x13   :  { %32 = shalt.err (%p55_p1)  }
  0x14   :  { %34 = vsyncmov [#allocation2 + $0x2] }
  0x17   :  { %s35_s0 = vpop.sfrf %34 }
  0x18   :  { %p56_p2 = scmp.ne.s32.totalorder %s35_s0, 0 }
  0x1a   :  { %39 = shalt.err (%p56_p2)  }
  0x1b   :  { %41 = vsyncmov [#allocation2 + $0x3] }
  0x1e   :  { %s42_s1 = vpop.sfrf %41 }
  0x1f   :  { %p57_p3 = scmp.ne.s32.totalorder %s42_s1, 0 }
  0x21   :  { %46 = shalt.err (%p57_p3)  }
  0x22   :  { %48 = vsyncmov [#allocation2 + $0x4] }
  0x25   :  { %s49_s17 = vpop.sfrf %48 }
  0x26   :  { %p58_p4 = scmp.ne.s32.totalorder %s49_s17, 0 }
  0x28   :  { %53 = shalt.err (%p58_p4)  }

</bundles_post_ra>
